<compile_context>
chip_gen: v5e
topology: v5e:2x2
jax: 0.10.0
libtpu: 0.0.40
codegen_flags: <defaults>
</compile_context>

<pallas_src>
import functools

import jax
import jax.numpy as jnp
import numpy as np
from jax import lax
from jax.experimental import pallas as pl
from jax.experimental.pallas import tpu as pltpu


def _round_up(a, b):
    return (a + b - 1) // b * b


def _conv1d_kernel(*refs, taps, c_in_p, tile_l, relu, use_bias):
    """One (batch element, L_out tile) grid step.

    Refs (leading squeezed dims removed via `None` entries in block_shape):
      w_ref : (K, C_out_p, C_in_p)         grid-resident per-tap weights
      b_ref : (C_out_p, 1)                 only present when use_bias
      x_ref : (stride * C_in_p, TILE_IN)   phase-major input tile (with halo)
      o_ref : (C_out_p, TILE_L)            lane-dense output tile
    """
    if use_bias:
        w_ref, b_ref, x_ref, o_ref = refs
    else:
        w_ref, x_ref, o_ref = refs
        b_ref = None

    acc = None
    # Unrolled K-tap loop: each tap is one MXU matmul against a statically
    # shifted slice of the VMEM-resident input tile (in-kernel unfold; the
    # input is read from HBM exactly once, not K times).
    for k, r, q in taps:
        xs = x_ref[r * c_in_p:(r + 1) * c_in_p, q:q + tile_l]   # (C_in_p, TILE_L)
        d = jnp.dot(w_ref[k], xs, preferred_element_type=jnp.float32)
        acc = d if acc is None else acc + d
    if use_bias:
        acc = acc + b_ref[...]              # (C_out_p, 1) broadcasts over lanes
    if relu:
        acc = jnp.maximum(acc, 0.0)
    o_ref[...] = acc.astype(o_ref.dtype)


def conv1d_pallas(x, weight, bias, *, stride, padding, relu=True, tile_l=512):
    """nn.Conv1d(+ReLU) forward.  x: (N, C_in, L), weight: (C_out, C_in, K),
    bias: (C_out,) or None.  Returns (N, C_out, L_out)."""
    N, C_in, L = x.shape
    C_out, _, K = weight.shape
    s = int(stride)
    L_out = (L + 2 * padding - K) // s + 1
    assert L_out >= 1, "empty conv output"

    # ---- tiling / padding choices ------------------------------------------
    C_in_p = _round_up(C_in, 8)            # sublane granule
    C_out_p = _round_up(C_out, 8)
    QM = (K - 1) // s                      # max in-kernel shift (halo size)

    tile_l = max(128, _round_up(tile_l, 128))
    L_out_128 = _round_up(L_out, 128)      # lane-dense output (>=128 lanes)
    TILE_L = L_out_128 if L_out_128 <= tile_l else tile_l
    L_out_p = _round_up(L_out, TILE_L)
    n_t = L_out_p // TILE_L
    TILE_IN = TILE_L + QM                  # input tile incl. right halo

    # ---- glue (plain JAX): pad + stride-phase split, no Kx inflation -------
    # x_ph[n, r*C_in_p + ci, m] = x_pad[n, ci, m*s + r], so tap k = q*s + r
    # needs the contiguous slice x_ph[.., r-block, q : q + TILE_L].
    M_total = max(L_out_p + QM, -(-(L + 2 * padding) // s))
    L_ext = M_total * s
    x_pad = jnp.pad(x, ((0, 0), (0, 0), (padding, L_ext - L - padding)))
    x_ph = x_pad.reshape(N, C_in, M_total, s)
    x_ph = jnp.moveaxis(x_ph, 3, 1)                              # (N, s, C_in, M)
    x_ph = jnp.pad(x_ph, ((0, 0), (0, 0), (0, C_in_p - C_in), (0, 0)))
    x_ph = x_ph.reshape(N, s * C_in_p, M_total)                  # r-major, ci-minor
    # Overlapping L tiles (halo of QM elements -> ~QM/TILE_L extra bytes only).
    x_t = jnp.stack(
        [x_ph[:, :, t * TILE_L: t * TILE_L + TILE_IN] for t in range(n_t)],
        axis=1)                                                  # (N, n_t, s*C_in_p, TILE_IN)

    # Per-tap weights (K, C_out_p, C_in_p); zero channel padding is inert.
    w_t = jnp.transpose(weight, (2, 0, 1))
    w_t = jnp.pad(w_t, ((0, 0), (0, C_out_p - C_out), (0, C_in_p - C_in)))

    use_bias = bias is not None
    args = [w_t]
    in_specs = [pl.BlockSpec((K, C_out_p, C_in_p), lambda n, t: (0, 0, 0))]
    if use_bias:
        b_p = jnp.pad(bias, ((0, C_out_p - C_out),)).reshape(C_out_p, 1)
        args.append(b_p.astype(x.dtype))
        in_specs.append(pl.BlockSpec((C_out_p, 1), lambda n, t: (0, 0)))
    args.append(x_t)
    in_specs.append(
        pl.BlockSpec((None, None, s * C_in_p, TILE_IN), lambda n, t: (n, t, 0, 0)))

    taps = tuple((k, k % s, k // s) for k in range(K))           # k = q*s + r
    kernel = functools.partial(_conv1d_kernel, taps=taps, c_in_p=C_in_p,
                               tile_l=TILE_L, relu=relu, use_bias=use_bias)

    # VMEM budget: double-buffered blocks + resident weights/bias + headroom,
    # capped at 64 MiB so the same tiling is safe on v7x.
    itemsize = x.dtype.itemsize
    blk_bytes = (s * C_in_p * TILE_IN + C_out_p * TILE_L
                 + K * C_out_p * C_in_p + (C_out_p if use_bias else 0)) * itemsize
    vmem_bytes = int(min(max(2 * blk_bytes + (2 << 20), 16 << 20), 64 << 20))

    out_p = pl.pallas_call(
        kernel,
        out_shape=jax.ShapeDtypeStruct((N, C_out_p, L_out_p), x.dtype),
        grid_spec=pltpu.PrefetchScalarGridSpec(
            num_scalar_prefetch=0,
            grid=(N, n_t),
            in_specs=in_specs,
            out_specs=pl.BlockSpec((None, C_out_p, TILE_L), lambda n, t: (n, 0, t)),
        ),
        compiler_params=pltpu.CompilerParams(
            dimension_semantics=("parallel", "parallel"),
            vmem_limit_bytes=vmem_bytes,
        ),
    )(*args)
    return out_p[:, :C_out, :L_out]


class Conv1dPallas:
    """Mirror of the PyTorch Conv1d wrapper module (conv + optional ReLU)."""

    def __init__(self, input_channels, output_channels, kernel_size, stride,
                 same_padding, bias=True, relu=True, *, key):
        self.stride = stride
        self.padding = int((kernel_size - 1) / 2) if same_padding else 0
        self.relu = relu
        k_w, k_b = jax.random.split(key)
        # Deterministic init matching nn.Conv1d's uniform(-bound, bound) scale.
        fan_in = input_channels * kernel_size
        bound = 1.0 / np.sqrt(fan_in)
        self.weight = jax.random.uniform(
            k_w, (output_channels, input_channels, kernel_size),
            dtype=jnp.float32, minval=-bound, maxval=bound)
        self.bias = (jax.random.uniform(
            k_b, (output_channels,), dtype=jnp.float32,
            minval=-bound, maxval=bound) if bias else None)

    def __call__(self, x):
        return conv1d_pallas(x, self.weight, self.bias,
                             stride=self.stride, padding=self.padding,
                             relu=self.relu)


if __name__ == "__main__":
    key = jax.random.PRNGKey(0)
    k_x, k_p, k_x2, k_p2 = jax.random.split(key, 4)

    def reference(x, mod):
        ref = lax.conv_general_dilated(
            x, mod.weight, window_strides=(mod.stride,),
            padding=[(mod.padding, mod.padding)],
            dimension_numbers=("NCH", "OIH", "NCH"))
        if mod.bias is not None:
            ref = ref + mod.bias[None, :, None]
        if mod.relu:
            ref = jnp.maximum(ref, 0.0)
        return ref

    # Case 1: stride=1, same padding, bias + ReLU.
    N, C_in, C_out, L, K, stride = 2, 4, 8, 16, 3, 1
    x = jax.random.normal(k_x, (N, C_in, L), dtype=jnp.float32)
    mod = Conv1dPallas(C_in, C_out, K, stride, same_padding=True,
                       bias=True, relu=True, key=k_p)
    out = jax.block_until_ready(mod(x))
    ref = reference(x, mod)
    assert out.shape == ref.shape
    np.testing.assert_allclose(np.asarray(out), np.asarray(ref),
                               rtol=1e-5, atol=1e-5)

    # Case 2: stride=2, no padding, no bias, no ReLU (exercises the phase path).
    N2, C_in2, C_out2, L2, K2, stride2 = 2, 3, 5, 19, 4, 2
    x2 = jax.random.normal(k_x2, (N2, C_in2, L2), dtype=jnp.float32)
    mod2 = Conv1dPallas(C_in2, C_out2, K2, stride2, same_padding=False,
                        bias=False, relu=False, key=k_p2)
    out2 = jax.block_until_ready(mod2(x2))
    ref2 = reference(x2, mod2)
    assert out2.shape == ref2.shape
    np.testing.assert_allclose(np.asarray(out2), np.asarray(ref2),
                               rtol=1e-5, atol=1e-5)

    print("KERNEL_OK")
</pallas_src>

<mosaic_0001>
module attributes {stable_mosaic.version = 11 : i64} {
  func.func @_conv1d_kernel(%arg0: i32, %arg1: i32, %arg2: memref<3x8x8xf32, #tpu.memory_space<vmem>>, %arg3: memref<8x1xf32, #tpu.memory_space<vmem>>, %arg4: memref<1x1x8x130xf32, #tpu.memory_space<vmem>>, %arg5: memref<1x8x128xf32, #tpu.memory_space<vmem>>) attributes {dimension_semantics = [#tpu.dimension_semantics<parallel>, #tpu.dimension_semantics<parallel>], iteration_bounds = array<i64: 2, 1>, scalar_prefetch = 0 : i64, scratch_operands = 0 : i64, tpu.core_type = #tpu.core_type<tc>, window_params = [{pipeline_mode = #tpu.pipeline_mode<synchronous>, transform_indices = @transform_0, window_bounds = array<i64: 3, 8, 8>}, {pipeline_mode = #tpu.pipeline_mode<synchronous>, transform_indices = @transform_1, window_bounds = array<i64: 8, 1>}, {transform_indices = @transform_2, window_bounds = array<i64: 1, 1, 8, 130>}, {transform_indices = @transform_3, window_bounds = array<i64: 1, 8, 128>}]} {
    %c0 = arith.constant 0 : index
    %c0_0 = arith.constant 0 : index
    %c0_1 = arith.constant 0 : index
    %c0_2 = arith.constant 0 : index
    %0 = vector.load %arg4[%c0, %c0_0, %c0_1, %c0_2] : memref<1x1x8x130xf32, #tpu.memory_space<vmem>>, vector<1x1x8x128xf32>
    %1 = vector.shape_cast %0 : vector<1x1x8x128xf32> to vector<8x128xf32>
    %c0_3 = arith.constant 0 : index
    %c0_4 = arith.constant 0 : index
    %c0_5 = arith.constant 0 : index
    %2 = vector.load %arg2[%c0_3, %c0_4, %c0_5] : memref<3x8x8xf32, #tpu.memory_space<vmem>>, vector<1x8x8xf32>
    %3 = vector.shape_cast %2 : vector<1x8x8xf32> to vector<8x8xf32>
    %cst = arith.constant dense<0.000000e+00> : vector<8x128xf32>
    %4 = tpu.matmul %3, %1, %cst {dimension_numbers = #tpu.dot_dimension_numbers<[1], [0], [0], [1], [0, 0, 1, 1], [], []>} : vector<8x8xf32>, vector<8x128xf32>, vector<8x128xf32> -> vector<8x128xf32>
    %c0_6 = arith.constant 0 : index
    %c0_7 = arith.constant 0 : index
    %c0_8 = arith.constant 0 : index
    %c1 = arith.constant 1 : index
    %5 = vector.load %arg4[%c0_6, %c0_7, %c0_8, %c1] : memref<1x1x8x130xf32, #tpu.memory_space<vmem>>, vector<1x1x8x128xf32>
    %6 = vector.shape_cast %5 : vector<1x1x8x128xf32> to vector<8x128xf32>
    %c1_9 = arith.constant 1 : index
    %c0_10 = arith.constant 0 : index
    %c0_11 = arith.constant 0 : index
    %7 = vector.load %arg2[%c1_9, %c0_10, %c0_11] : memref<3x8x8xf32, #tpu.memory_space<vmem>>, vector<1x8x8xf32>
    %8 = vector.shape_cast %7 : vector<1x8x8xf32> to vector<8x8xf32>
    %cst_12 = arith.constant dense<0.000000e+00> : vector<8x128xf32>
    %9 = tpu.matmul %8, %6, %cst_12 {dimension_numbers = #tpu.dot_dimension_numbers<[1], [0], [0], [1], [0, 0, 1, 1], [], []>} : vector<8x8xf32>, vector<8x128xf32>, vector<8x128xf32> -> vector<8x128xf32>
    %10 = arith.addf %4, %9 : vector<8x128xf32>
    %c0_13 = arith.constant 0 : index
    %c0_14 = arith.constant 0 : index
    %c0_15 = arith.constant 0 : index
    %c2 = arith.constant 2 : index
    %11 = vector.load %arg4[%c0_13, %c0_14, %c0_15, %c2] : memref<1x1x8x130xf32, #tpu.memory_space<vmem>>, vector<1x1x8x128xf32>
    %12 = vector.shape_cast %11 : vector<1x1x8x128xf32> to vector<8x128xf32>
    %c2_16 = arith.constant 2 : index
    %c0_17 = arith.constant 0 : index
    %c0_18 = arith.constant 0 : index
    %13 = vector.load %arg2[%c2_16, %c0_17, %c0_18] : memref<3x8x8xf32, #tpu.memory_space<vmem>>, vector<1x8x8xf32>
    %14 = vector.shape_cast %13 : vector<1x8x8xf32> to vector<8x8xf32>
    %cst_19 = arith.constant dense<0.000000e+00> : vector<8x128xf32>
    %15 = tpu.matmul %14, %12, %cst_19 {dimension_numbers = #tpu.dot_dimension_numbers<[1], [0], [0], [1], [0, 0, 1, 1], [], []>} : vector<8x8xf32>, vector<8x128xf32>, vector<8x128xf32> -> vector<8x128xf32>
    %16 = arith.addf %10, %15 : vector<8x128xf32>
    %c0_20 = arith.constant 0 : index
    %c0_21 = arith.constant 0 : index
    %17 = vector.load %arg3[%c0_20, %c0_21] : memref<8x1xf32, #tpu.memory_space<vmem>>, vector<8x1xf32>
    %18 = vector.broadcast %17 : vector<8x1xf32> to vector<8x128xf32>
    %19 = arith.addf %16, %18 : vector<8x128xf32>
    %cst_22 = arith.constant 0.000000e+00 : f32
    %20 = vector.broadcast %cst_22 : f32 to vector<8x128xf32>
    %21 = arith.maximumf %19, %20 : vector<8x128xf32>
    %c0_23 = arith.constant 0 : index
    %c0_24 = arith.constant 0 : index
    %c0_25 = arith.constant 0 : index
    %22 = vector.load %arg5[%c0_23, %c0_24, %c0_25] : memref<1x8x128xf32, #tpu.memory_space<vmem>>, vector<1x8x128xf32>
    %23 = vector.shape_cast %22 : vector<1x8x128xf32> to vector<8x128xf32>
    %24 = vector.shape_cast %21 : vector<8x128xf32> to vector<1x8x128xf32>
    tpu.vector_store %arg5[%c0_23, %c0_24, %c0_25], %24 {strides = array<i32>} : memref<1x8x128xf32, #tpu.memory_space<vmem>>, vector<1x8x128xf32>,
    return
  }
  func.func @transform_0(%arg0: i32, %arg1: i32) -> (i32, i32, i32) {
    %c0_i32 = arith.constant 0 : i32
    %c0_i32_0 = arith.constant 0 : i32
    %c0_i32_1 = arith.constant 0 : i32
    %c0_i32_2 = arith.constant 0 : i32
    return %c0_i32, %c0_i32_0, %c0_i32_1 : i32, i32, i32
  }
  func.func @transform_1(%arg0: i32, %arg1: i32) -> (i32, i32) {
    %c0_i32 = arith.constant 0 : i32
    %c0_i32_0 = arith.constant 0 : i32
    %c0_i32_1 = arith.constant 0 : i32
    return %c0_i32, %c0_i32_0 : i32, i32
  }
  func.func @transform_2(%arg0: i32, %arg1: i32) -> (i32, i32, i32, i32) {
    %c0_i32 = arith.constant 0 : i32
    %c0_i32_0 = arith.constant 0 : i32
    %c0_i32_1 = arith.constant 0 : i32
    return %arg0, %arg1, %c0_i32, %c0_i32_0 : i32, i32, i32, i32
  }
  func.func @transform_3(%arg0: i32, %arg1: i32) -> (i32, i32, i32) {
    %c0_i32 = arith.constant 0 : i32
    %c0_i32_0 = arith.constant 0 : i32
    return %arg0, %c0_i32, %arg1 : i32, i32, i32
  }
}

</mosaic_0001>

<bundles_post_ra>
// kernel: tpu_custom_call.1
= control target key start
LH: loop header
LB: loop body
LE: loop exit
PB: predicated region body
PF: predicated region fallthrough
CT: control target
= control target key end

     0   :  { %8 = vsyncpa [#allocation3], 0  ;;  %s872_s0 = inlined_call_operand.hbm [shape: f32[3,8,8], index: 0, kind: input, shape index: {}]   ;;  %s873_s1 = inlined_call_operand.vmem [shape: f32[8,1], index: 1, kind: input, shape index: {}]   ;;  %s874_s2 = inlined_call_operand.hbm [shape: f32[2,1,8,130], index: 2, kind: input, shape index: {}]   ;;  %s875_s3 = inlined_call_operand.hbm [shape: f32[2,8,128], index: 3, kind: output, shape index: {}]  }
   0x1   :  { %9 = vsyncpa [#allocation6], 0 }
   0x2   :  { %11 = vsyncpa [#allocation6 + $0x1], 0 }
   0x3   :  { %12 = vsyncpa [#allocation4], 0 }
   0x4   :  { %14 = vsyncpa [#allocation4 + $0x1], 0  ;;  %s722_s12 = smov 0   ;;  %s724_s13 = smov 0  }
   0x5   :  { %s726_s14 = smov 0   ;;  %s728_s15 = smov 0  }
   0x6   :  { %s730_s16 = smov 0   ;;  %s732_s17 = smov 0  }
   0x7 LB: > { %s438_s18 = sadd.s32 4294967295, %s694_s17   ;;  %p440_p0 = scmp.ge.s32.totalorder %s694_s17, 1  ;;  %s694_s17 = sphi %s732_s17, %s20_s17   ;;  %s690_s16 = sphi %s730_s16, %s886_s16   ;;  %s686_s15 = sphi %s728_s15, %s885_s15   ;;  %s682_s14 = sphi %s726_s14, %s884_s14   ;;  %s678_s13 = sphi %s724_s13, %s883_s13   ;;  %s674_s12 = sphi %s722_s12, %s882_s12  }
   0x8   : > { %p754_p1 = scmp.eq.s32.totalorder %s438_s18, 0  ;;  %p135_p2 = scmp.lt.s32.totalorder %s694_s17, 3 }
   0x9   : > { %s146_s22 = sshll.u32 %s872_s0, 4  ;;  %s696_s24 = smov [#allocation2]   ;;  %s147_s22 = int_to_ptr.hbm [resolvable:$true] %s146_s22 }
   0xa   : > { %p762_p3 = pnand %p440_p0, %p135_p2  ;;  %s148_s25 = sshll.u32 %s696_s24, 4  ;;  %s149_s25 = int_to_ptr.vmem [resolvable:$true] %s148_s25 }
   0xb   : > { %p442_p6 = scmp.ge.s32.totalorder %s694_s17, 2  ;;  %s697_s26 = smov 128  }
   0xc   : > { %p466_p4 = pneg %p762_p3  ;;  %s698_s27 = smov 8  }
   0xd   : > { %s439_s28 = sadd.s32 4294967294, %s694_s17   ;;  %s32_s29 = sadd.s32 1, %s690_s16 }
   0xe   : > { %p467_p5 = pnand %p466_p4, %p754_p1  ;;  %s83_s30 = sadd.s32 1, %s682_s14 }
   0xf   : > { %p34_p7 = scmp.ge.s32.totalorder %s32_s29, 2  ;;  %p90_p8 = scmp.ne.s32.totalorder %s682_s14, %s678_s13 }
  0x10   : > { %469 = dma.hbm_to_vmem [thread:$0]  (!%p467_p5), %s147_s22, 384, %s149_s25, [#allocation3], %s697_s26, %s697_s26, %s698_s27  }
  0x11   : > { %p91_p9 = scmp.eq.s32.totalorder %s694_s17, 0  ;;  %p96_p10 = scmp.ne.s32.totalorder %s678_s13, %s674_s12 }
  0x12   : > { %s888_s29 = smov (%p34_p7, %s32_s29), 0  ;;  %p122_p13 = scmp.eq.s32.totalorder %s438_s18, 1 }
  0x13   : > { %p781_p11 = por %p91_p9, %p90_p8  ;;  %p787_p12 = por %p754_p1, %p96_p10 }
  0x14   : > { %s78_s6 = ssub.s32 %s690_s16, %s888_s29  ;;  %p128_p2 = scmp.eq.s32.totalorder %s439_s28, 1 }
  0x15   : > { %p81_p0 = scmp.eq.s32.totalorder %s78_s6, 0  ;;  %p793_p4 = por %p122_p13, %p90_p8 }
  0x16   : > { %p479_p5 = scmp.lt.s32.totalorder %s694_s17, 2  ;;  %p801_p7 = por %p128_p2, %p96_p10 }
  0x17   : > { %s799_s8 = scalar_select %p81_p0, %s682_s14, %s83_s30  }
  0x18   : > { %s165_s10 = sand.u32 1, %s682_s14   ;;  %s457_s20 = sshll.u32 %s690_s16, 4 }
  0x19   : > { %s443_s11 = sshll.u32 %s165_s10, 4  ;;  %s176_s18 = scalar_lea.hbm %s874_s2, %s457_s20 }
  0x1a   : > { %s169_s24 = scalar_lea.vmem [#allocation5], %s443_s11  ;;  %s178_s26 = sshll.u32 %s176_s18, 4  ;;  %s179_s26 = int_to_ptr.hbm [resolvable:$true] %s178_s26 }
  0x1b   : > { %s180_s25 = sshll.u32 %s169_s24, 4  ;;  %p471_p8 = pnand %p479_p5, %p781_p11  ;;  %s181_s25 = int_to_ptr.vmem [resolvable:$true] %s180_s25 }
  0x1c   : > { %s166_s27 = scalar_lea.sflag [#allocation6], %s165_s10  ;;  %189 = sbr.rel (%p762_p3) target bundleno = 305 (0x131), region = 32 }
  0x1d   : > { %473 = dma.hbm_to_vmem [thread:$0]  (!%p471_p8), %s179_s26, 256, %s181_s25, %s166_s27  }
  0x21   : > { %661 = dma.done.wait (%p754_p1), [#allocation3], 384  }
  0x22   : > { %663 = vsyncadd (%p754_p1), [#allocation3], 4294966912  ;;  %s819_s28 = sand.u32 1, %s678_s13  }
  0x23   : > { %s448_s30 = sshll.u32 %s819_s28, 4  ;;  %s197_s4 = scalar_lea.sflag [#allocation6], %s819_s28 }
  0x24   : > { %s200_s6 = scalar_lea.vmem [#allocation5], %s448_s30 }
  0x25   : > { %665 = dma.done.wait (%p787_p12), %s197_s4, 256  }
  0x26   : > { %667 = vsyncadd (%p787_p12), %s197_s4, 4294967040  ;;  %v224_v0 = vld [vmem:[%s200_s6] sm:$0xff]  ;;  %v226_v1 = vld [vmem:[%s200_s6 + $0x8] sm:$0xff]  ;;  %s699_s19 = smov 126   ;;  %s700_s23 = smov 127   ;;  %vm238_vm0 = vcmask 64512  }
  0x27   : > { %v536_v2 = vpack.i.bf16 %v226_v1, %v224_v0  ;;  %280 = vmatpush.msra.mxu1 %v224_v0  ;;  %v225_v3 = vld [vmem:[#allocation2] sm:$0xff]  ;;  %v701_v5 = vmov 0   ;;  %vm291_vm1 = vcmask 1031168   ;;  %v286_v9 = vld [vmem:[#allocation2 + $0x10] sm:$0xff]  ;;  %vm235_vm2 = vcmask 1039360   ;;  %v228_v14 = vld [vmem:[#allocation2 + $0x8] sm:$0xff] }
  0x28   : > { %451 = vmatmul.msk.f32.vlgmr.msra.gmra.mxu1 %vm238_vm0, %v225_v3  ;;  %v318_v4 = vld [vmem:[%s873_s1] sm:$0xff]  ;;  %546 = vset.pattern.permute.xlu1 %v701_v5  ;;  %s449_s5 = sshll.u32 %s819_s28, 3  ;;  %s454_s20 = sshll.u32 %s686_s15, 3 }
  0x29   : > { %537 = vrot.lane.b32.xlu0 %v536_v2, %s699_s19  ;;  %321 = vperm.xlu1 %546, %v318_v4   ;;  %s339_s18 = scalar_lea.hbm %s875_s3, %s454_s20  ;;  %s223_s24 = scalar_lea.vmem [#allocation7], %s449_s5 }
  0x2a   : > { %547 = vset.pattern.permute.xlu0 %v701_v5  ;;  %s341_s25 = sshll.u32 %s223_s24, 4  ;;  %s343_s26 = sshll.u32 %s339_s18, 4  ;;  %s342_s25 = int_to_ptr.vmem [resolvable:$true] %s341_s25  ;;  %s344_s26 = int_to_ptr.hbm [resolvable:$true] %s343_s26 }
  0x2b   : > { %s328_s27 = scalar_lea.sflag [#allocation4], %s819_s28  ;;  %s622_s15 = sshra.s32 %s344_s26, 4  ;;  %s623_s15 = int_to_ptr.hbm [resolvable:$true] %s622_s15 }
  0x2c   : > { %s624_s30 = scalar_lea.hbm %s623_s15, 8  ;;  %s628_s19 = scalar_lea.hbm %s875_s3, 16 }
  0x2d   : > { %p625_p1 = scmp.ne.s32.totalorder %s623_s15, %s624_s30  ;;  %p629_p10 = scmp.lt.s32.totalorder %s623_s15, %s875_s3 }
  0x2e   : > { %p630_p11 = scmp.lt.s32.totalorder %s628_s19, %s624_s30 }
  0x2f   : > { %p626_p3 = pnand %p625_p1, %p793_p4 }
  0x30   : > { %p631_p12 = por %p630_p11, %p629_p10 }
  0x31   : > { %542 = vrot.lane.b32.xlu0 %v536_v2, %s700_s23  ;;  %p627_p9 = pneg %p626_p3 }
  0x33   : > { %p632_p13 = pnand %p631_p12, %p627_p9 }
  0x9b   : > { %v538_v6 = vpop.permute.xlu0 %537  ;;  %v322_v20 = vpop.permute.xlu1 %321 }
  0x9c   : > { %v540_v7 = vunpack.i.h.bf16 %v538_v6  ;;  %v539_v8 = vunpack.i.l.bf16 %v538_v6 }
  0x9e   : > { %v292_v10 = vsel %vm291_vm1, %v539_v8, %v540_v7 }
  0x9f   : > { %312 = vmatpush.msra.mxu2 %v292_v10 }
  0xa0   : > { %452 = vmatmul.msk.f32.vlgmr.msra.gmra.mxu2 %vm238_vm0, %v286_v9 }
  0xa3   : > { %v543_v11 = vpop.permute.xlu0 %542 }
  0xa4   : > { %v545_v12 = vunpack.i.h.bf16 %v543_v11  ;;  %v544_v13 = vunpack.i.l.bf16 %v543_v11 }
  0xa5   : > { %v282_v16 = vpop.f32.mrf.mxu1 }
  0xa6   : > { %v236_v15 = vsel %vm235_vm2, %v544_v13, %v545_v12 }
  0xa7   : > { %257 = vmatpush.msra.mxu0 %v236_v15 }
  0xa8   : > { %450 = vmatmul.msk.f32.vlgmr.msra.gmra.mxu0 %vm238_vm0, %v228_v14 }
 0x123   : > { %v314_v18 = vpop.f32.mrf.mxu2 }
 0x125   : > { %v259_v17 = vpop.f32.mrf.mxu0 }
 0x126   : > { %v283_v19 = vadd.f32 %v282_v16, %v259_v17 }
 0x128   : > { %v317_v21 = vadd.f32 %v314_v18, %v283_v19 }
 0x12a   : > { %v324_v22 = vadd.f32 %v322_v20, %v317_v21 }
 0x12c   : > { %v325_v23 = vmax.f32 %v324_v22, 0.0 }
 0x12e   : > { %326 = vst [vmem:[%s223_s24] sm:$0xff] %v325_v23 }
 0x12f   : > { %635 = shalt.err (!%p632_p13)
}
 0x130   : > { %464 = dma.vmem_to_hbm [thread:$0]  (%p793_p4), %s342_s25, 128, %s344_s26, %s328_s27  }
 0x131 PF: > { %s355_s28 = sand.u32 1, %s674_s12   ;;  %p475_p0 = pnand %p442_p6, %p801_p7 }
 0x132   : > { %s356_s11 = scalar_lea.sflag [#allocation4], %s355_s28 }
 0x133   : > { %p476_p2 = pneg %p475_p0 }
 0x135   : > { %669 = dma.done.wait (%p476_p2), %s356_s11, 128  }
 0x136   : > { %671 = vsyncadd (%p476_p2), %s356_s11, 4294967168  ;;  %s20_s17 = sadd.s32 1, %s694_s17   ;;  %s882_s12 = smov %s678_s13 }
 0x137   : > { %p17_p5 = scmp.ge.s32.totalorder %s20_s17, 4   ;;  %s883_s13 = smov %s682_s14 }
 0x138   : > { %s884_s14 = smov %s799_s8  ;;  %s885_s15 = smov %s690_s16 }
 0x139   : > { %s886_s16 = smov %s888_s29  ;;  %19 = sbr.rel (!%p17_p5) target bundleno = 7 (0x7), region = 84 }
 0x13e   :  { %362 = vsyncpa [#allocation3], 1 }
 0x13f   :  { %364 = vsyncpa [#allocation3 + $0x1], 1 }
 0x140   :  { %365 = vsyncpa [#allocation6], 1 }
 0x141   :  { %367 = vsyncpa [#allocation6 + $0x1], 1 }
 0x142   :  { %368 = vsyncpa [#allocation4], 1 }
 0x143   :  { %370 = vsyncpa [#allocation4 + $0x1], 1 }

</bundles_post_ra>
